<compile_context>
chip_gen: v5e
topology: v5e:2x2
jax: 0.10.0
libtpu: 0.0.40
codegen_flags: <defaults>
</compile_context>

<pallas_src>
import functools

import jax
import jax.numpy as jnp
from jax.experimental import pallas as pl
from jax.experimental.pallas import tpu as pltpu


# ----------------------------- kernels ---------------------------------------


def _relu(v):
    return jnp.maximum(v, 0.0)


def _apply_mlp(h, wb_refs, act):
    """Channel-major MLP: h is [C_in, TP]; weights [out, in]; biases [out, 1]."""
    n_layers = len(wb_refs) // 2
    for i in range(n_layers):
        w = wb_refs[2 * i][...]        # [out, in]
        b = wb_refs[2 * i + 1][...]    # [out, 1]
        h = jnp.dot(w, h, preferred_element_type=jnp.float32) + b
        if i < n_layers - 1:
            h = act(h)
    return h


def stage1_kernel(n_f, n_b2, inv_p, modes, x1_ref, x2_ref, *rest):
    """grid = (B, P//TP).

    Fused (block-diagonal) branch1+trunk1 MLP on the x tile, elementwise
    merge, running point-sum in a VMEM scratch, and — on the last pt step —
    the branch-2 MLP on the mean, written to the [modes*C_out, 1] output.
    """
    brn_ref, msum_ref = rest[-2], rest[-1]
    args = rest[:-2]
    wf = args[:2 * n_f]                         # fused branch1+trunk1 layers
    wb2 = args[2 * n_f:2 * n_f + 2 * n_b2]      # branch2 layers

    x = jnp.concatenate([x1_ref[...], x2_ref[...]], axis=0)   # [c_f+c_l, TP]
    h = _apply_mlp(x, wf, _relu)                               # [2*modes, TP]
    merge = h[:modes, :] * h[modes:, :]                        # [modes, TP]

    @pl.when(pl.program_id(1) == 0)
    def _():
        msum_ref[...] = jnp.zeros_like(msum_ref)

    msum_ref[...] += jnp.sum(merge, axis=1, keepdims=True)     # [modes, 1]

    @pl.when(pl.program_id(1) == pl.num_programs(1) - 1)
    def _():
        avg = msum_ref[...] * inv_p                            # [modes, 1]
        brn_ref[...] = _apply_mlp(avg, wb2, _relu)             # [modes*C_out, 1]


def stage2_kernel(n_f, n_t2, modes, x1_ref, x2_ref, brn_ref, *rest):
    """grid = (B, P//TP), fully parallel.

    Recomputes merge from the x tiles (cheaper than round-tripping it through
    HBM), applies trunk-2, multiplies by the per-batch branch-2 vector, and
    contracts modes via S_T @ prod so the result and the store are lane-dense.
    """
    o_ref = rest[-1]
    args = rest[:-1]
    wf = args[:2 * n_f]
    wt2 = args[2 * n_f:2 * n_f + 2 * n_t2]
    s_ref = args[2 * n_f + 2 * n_t2]            # [C_out, modes*C_out]
    bias_ref = args[2 * n_f + 2 * n_t2 + 1]     # (1, 1) scalar in SMEM

    x = jnp.concatenate([x1_ref[...], x2_ref[...]], axis=0)   # [c_f+c_l, TP]
    h = _apply_mlp(x, wf, _relu)                               # [2*modes, TP]
    merge = h[:modes, :] * h[modes:, :]                        # [modes, TP]

    out_trunk = _apply_mlp(merge, wt2, jnp.sin)                # [M*C_out, TP]
    prod = out_trunk * brn_ref[...]                            # bcast over lanes

    # einsum('bmc,bpmc->bpc') == S_T @ (trunk * branch), lane-dense result.
    out = jnp.dot(s_ref[...], prod, preferred_element_type=jnp.float32)
    o_ref[...] = out + bias_ref[0, 0]


# ----------------------------- wrapper ---------------------------------------


def _block_diag_params(wa, wb):
    """Fuse two same-depth MLP param lists into block-diagonal layers."""
    assert len(wa) == len(wb), "branch1/trunk1 depths must match for fusion"
    fused = []
    for i in range(len(wa) // 2):
        w1, b1 = wa[2 * i], wa[2 * i + 1]
        w2, b2 = wb[2 * i], wb[2 * i + 1]
        o1, k1 = w1.shape
        o2, k2 = w2.shape
        w = jnp.zeros((o1 + o2, k1 + k2), jnp.float32)
        w = w.at[:o1, :k1].set(w1)
        w = w.at[o1:, k1:].set(w2)
        fused += [w, jnp.concatenate([b1, b2], axis=0)]
    return fused


def geo_deeponet_forward(x1, x2, params, modes, output_channels, tile_p=512):
    B, c_func, H, W, D = x1.shape
    c_loc = x2.shape[1]
    P = H * W * D
    tile_p = min(tile_p, P)
    assert P % tile_p == 0, (P, tile_p)
    npt = P // tile_p

    # channel-major, no transpose: 'b c h w d -> b c (h w d)'
    x1f = x1.reshape(B, c_func, P)
    x2f = x2.reshape(B, c_loc, P)

    wb1, wt1, wb2, wt2 = params["b1"], params["t1"], params["b2"], params["t2"]
    wf = _block_diag_params(wb1, wt1)        # fused branch1+trunk1 block-diag
    n_f = len(wf) // 2
    n_b2, n_t2 = len(wb2) // 2, len(wt2) // 2
    mc = modes * output_channels

    # Mode-selection matrix (transposed): S_T[c, k] = 1 iff k % C_out == c.
    k_idx = jnp.arange(mc)[None, :]
    c_idx = jnp.arange(output_channels)[:, None]
    S_T = (k_idx % output_channels == c_idx).astype(jnp.float32)

    b_param = jnp.asarray(params["b"], jnp.float32).reshape(1, 1)

    def full_spec(arr):
        nd = arr.ndim
        return pl.BlockSpec(arr.shape, lambda b, pt, _nd=nd: (0,) * _nd)

    # -------- stage 1: fused b1/t1 + merge-sum over points + branch2(mean) ---
    w1_inputs = list(wf) + list(wb2)
    in_specs1 = [
        pl.BlockSpec((None, c_func, tile_p), lambda b, pt: (b, 0, pt)),
        pl.BlockSpec((None, c_loc, tile_p), lambda b, pt: (b, 0, pt)),
    ] + [full_spec(a) for a in w1_inputs]
    out_specs1 = pl.BlockSpec((None, mc, 1), lambda b, pt: (b, 0, 0))

    out_b = pl.pallas_call(
        functools.partial(stage1_kernel, n_f, n_b2, 1.0 / P, modes),
        out_shape=jax.ShapeDtypeStruct((B, mc, 1), jnp.float32),
        grid_spec=pltpu.PrefetchScalarGridSpec(
            num_scalar_prefetch=0,
            grid=(B, npt),
            in_specs=in_specs1,
            out_specs=out_specs1,
            scratch_shapes=[pltpu.VMEM((modes, 1), jnp.float32)],
        ),
        compiler_params=pltpu.CompilerParams(
            dimension_semantics=("parallel", "arbitrary"),
        ),
    )(x1f, x2f, *w1_inputs)

    # -------- stage 2: recompute merge, trunk2, mode contraction --------------
    w2_inputs = list(wf) + list(wt2) + [S_T]
    in_specs2 = [
        pl.BlockSpec((None, c_func, tile_p), lambda b, pt: (b, 0, pt)),
        pl.BlockSpec((None, c_loc, tile_p), lambda b, pt: (b, 0, pt)),
        pl.BlockSpec((None, mc, 1), lambda b, pt: (b, 0, 0)),       # branch2
    ] + [full_spec(a) for a in w2_inputs] + [
        pl.BlockSpec(memory_space=pltpu.MemorySpace.SMEM),          # bias
    ]
    out_specs2 = pl.BlockSpec((None, output_channels, tile_p),
                              lambda b, pt: (b, 0, pt))

    out_flat = pl.pallas_call(
        functools.partial(stage2_kernel, n_f, n_t2, modes),
        out_shape=jax.ShapeDtypeStruct((B, output_channels, P), jnp.float32),
        grid_spec=pltpu.PrefetchScalarGridSpec(
            num_scalar_prefetch=0,
            grid=(B, npt),
            in_specs=in_specs2,
            out_specs=out_specs2,
        ),
        compiler_params=pltpu.CompilerParams(
            dimension_semantics=("parallel", "parallel"),
        ),
    )(x1f, x2f, out_b, *w2_inputs, b_param)

    # 'b c (h w d) -> b c h w d' — pure reshape, no transpose needed.
    return out_flat.reshape(B, output_channels, H, W, D)


# ----------------------------- reference (pure JAX) ---------------------------


def ref_forward(x1, x2, params, modes, output_channels):
    B, c_func, H, W, D = x1.shape
    c_loc = x2.shape[1]
    P = H * W * D
    x1f = x1.reshape(B, c_func, P)
    x2f = x2.reshape(B, c_loc, P)

    def mlp(h, wbs, act):
        n = len(wbs) // 2
        for i in range(n):
            w, b = wbs[2 * i], wbs[2 * i + 1]          # [out, in], [out, 1]
            h = jnp.einsum("oi,bip->bop", w, h) + b[None]
            if i < n - 1:
                h = act(h)
        return h

    br = mlp(x1f, params["b1"], jax.nn.relu)           # [B, M, P]
    tr = mlp(x2f, params["t1"], jax.nn.relu)           # [B, M, P]
    merge = br * tr
    avg = jnp.mean(merge, axis=2, keepdims=True)       # [B, M, 1]
    out_b = mlp(avg, params["b2"], jax.nn.relu)        # [B, M*C, 1]
    out_t = mlp(merge, params["t2"], jnp.sin)          # [B, M*C, P]
    out_b = out_b.reshape(B, modes, output_channels, 1)
    out_t = out_t.reshape(B, modes, output_channels, P)
    out = jnp.sum(out_b * out_t, axis=1) + params["b"]  # [B, C, P]
    return out.reshape(B, output_channels, H, W, D)


# ----------------------------- param init ------------------------------------


def init_mlp_params(key, dims):
    """Deterministic nn.Linear-like init; weights stored as [out, in]."""
    params = []
    for i in range(len(dims) - 1):
        key, kw, kb = jax.random.split(key, 3)
        fan_in = dims[i]
        scale = 1.0 / jnp.sqrt(jnp.float32(fan_in))
        w = jax.random.uniform(kw, (dims[i + 1], dims[i]), jnp.float32,
                               minval=-scale, maxval=scale)
        b = jax.random.uniform(kb, (dims[i + 1], 1), jnp.float32,
                               minval=-scale, maxval=scale)
        params += [w, b]
    return params, key


# ----------------------------- main -------------------------------------------


if __name__ == "__main__":
    B = 2
    input_channels_func = 4
    input_channels_loc = 3
    output_channels = 2
    modes = 16
    H = W_dim = D_dim = 8                 # P = 512 points -> tile_p = P, 1 step/b
    branch_net_layers = [32, 32]
    trunk_net_layers = [32, 32]

    key = jax.random.PRNGKey(0)

    b1_dims = [input_channels_func] + branch_net_layers + [modes]
    b2_dims = [modes] + branch_net_layers + [modes * output_channels]
    t1_dims = [input_channels_loc] + trunk_net_layers + [modes]
    t2_dims = [modes] + trunk_net_layers + [modes * output_channels]

    wb1, key = init_mlp_params(key, b1_dims)
    wb2, key = init_mlp_params(key, b2_dims)
    wt1, key = init_mlp_params(key, t1_dims)
    wt2, key = init_mlp_params(key, t2_dims)

    params = {
        "b1": wb1, "b2": wb2, "t1": wt1, "t2": wt2,
        "b": jnp.zeros((), jnp.float32),   # nn.Parameter(torch.tensor(0.0))
    }

    key, k1, k2 = jax.random.split(key, 3)
    x1 = jax.random.normal(k1, (B, input_channels_func, H, W_dim, D_dim),
                           jnp.float32)
    x2 = jax.random.normal(k2, (B, input_channels_loc, H, W_dim, D_dim),
                           jnp.float32)

    out = geo_deeponet_forward(x1, x2, params, modes, output_channels)
    out = jax.block_until_ready(out)

    ref = jax.block_until_ready(ref_forward(x1, x2, params, modes,
                                            output_channels))
    assert out.shape == (B, output_channels, H, W_dim, D_dim), out.shape
    assert jnp.allclose(out, ref, rtol=1e-4, atol=1e-4), \
        float(jnp.max(jnp.abs(out - ref)))

    print("KERNEL_OK")
</pallas_src>

<mosaic_0001>
module attributes {stable_mosaic.version = 11 : i64} {
  func.func @stage1_kernel(%arg0: i32, %arg1: i32, %arg2: memref<1x4x512xf32, #tpu.memory_space<vmem>>, %arg3: memref<1x3x512xf32, #tpu.memory_space<vmem>>, %arg4: memref<64x7xf32, #tpu.memory_space<vmem>>, %arg5: memref<64x1xf32, #tpu.memory_space<vmem>>, %arg6: memref<64x64xf32, #tpu.memory_space<vmem>>, %arg7: memref<64x1xf32, #tpu.memory_space<vmem>>, %arg8: memref<32x64xf32, #tpu.memory_space<vmem>>, %arg9: memref<32x1xf32, #tpu.memory_space<vmem>>, %arg10: memref<32x16xf32, #tpu.memory_space<vmem>>, %arg11: memref<32x1xf32, #tpu.memory_space<vmem>>, %arg12: memref<32x32xf32, #tpu.memory_space<vmem>>, %arg13: memref<32x1xf32, #tpu.memory_space<vmem>>, %arg14: memref<32x32xf32, #tpu.memory_space<vmem>>, %arg15: memref<32x1xf32, #tpu.memory_space<vmem>>, %arg16: memref<1x32x1xf32, #tpu.memory_space<vmem>>, %arg17: memref<16x1xf32, #tpu.memory_space<vmem>>) attributes {dimension_semantics = [#tpu.dimension_semantics<parallel>, #tpu.dimension_semantics<arbitrary>], iteration_bounds = array<i64: 2, 1>, scalar_prefetch = 0 : i64, scratch_operands = 1 : i64, tpu.core_type = #tpu.core_type<tc>, window_params = [{transform_indices = @transform_0, window_bounds = array<i64: 1, 4, 512>}, {transform_indices = @transform_1, window_bounds = array<i64: 1, 3, 512>}, {pipeline_mode = #tpu.pipeline_mode<synchronous>, transform_indices = @transform_2, window_bounds = array<i64: 64, 7>}, {pipeline_mode = #tpu.pipeline_mode<synchronous>, transform_indices = @transform_3, window_bounds = array<i64: 64, 1>}, {pipeline_mode = #tpu.pipeline_mode<synchronous>, transform_indices = @transform_4, window_bounds = array<i64: 64, 64>}, {pipeline_mode = #tpu.pipeline_mode<synchronous>, transform_indices = @transform_5, window_bounds = array<i64: 64, 1>}, {pipeline_mode = #tpu.pipeline_mode<synchronous>, transform_indices = @transform_6, window_bounds = array<i64: 32, 64>}, {pipeline_mode = #tpu.pipeline_mode<synchronous>, transform_indices = @transform_7, window_bounds = array<i64: 32, 1>}, {pipeline_mode = #tpu.pipeline_mode<synchronous>, transform_indices = @transform_8, window_bounds = array<i64: 32, 16>}, {pipeline_mode = #tpu.pipeline_mode<synchronous>, transform_indices = @transform_9, window_bounds = array<i64: 32, 1>}, {pipeline_mode = #tpu.pipeline_mode<synchronous>, transform_indices = @transform_10, window_bounds = array<i64: 32, 32>}, {pipeline_mode = #tpu.pipeline_mode<synchronous>, transform_indices = @transform_11, window_bounds = array<i64: 32, 1>}, {pipeline_mode = #tpu.pipeline_mode<synchronous>, transform_indices = @transform_12, window_bounds = array<i64: 32, 32>}, {pipeline_mode = #tpu.pipeline_mode<synchronous>, transform_indices = @transform_13, window_bounds = array<i64: 32, 1>}, {transform_indices = @transform_14, window_bounds = array<i64: 1, 32, 1>}]} {
    %c0 = arith.constant 0 : index
    %c0_0 = arith.constant 0 : index
    %c0_1 = arith.constant 0 : index
    %0 = vector.load %arg2[%c0, %c0_0, %c0_1] : memref<1x4x512xf32, #tpu.memory_space<vmem>>, vector<1x4x512xf32>
    %1 = vector.shape_cast %0 : vector<1x4x512xf32> to vector<4x512xf32>
    %c0_2 = arith.constant 0 : index
    %c0_3 = arith.constant 0 : index
    %c0_4 = arith.constant 0 : index
    %2 = vector.load %arg3[%c0_2, %c0_3, %c0_4] : memref<1x3x512xf32, #tpu.memory_space<vmem>>, vector<1x3x512xf32>
    %3 = vector.shape_cast %2 : vector<1x3x512xf32> to vector<3x512xf32>
    %4 = tpu.concatenate %1, %3 in 0 : vector<4x512xf32>, vector<3x512xf32> -> vector<7x512xf32>
    %c0_5 = arith.constant 0 : index
    %c0_6 = arith.constant 0 : index
    %5 = vector.load %arg4[%c0_5, %c0_6] : memref<64x7xf32, #tpu.memory_space<vmem>>, vector<64x7xf32>
    %c0_7 = arith.constant 0 : index
    %c0_8 = arith.constant 0 : index
    %6 = vector.load %arg5[%c0_7, %c0_8] : memref<64x1xf32, #tpu.memory_space<vmem>>, vector<64x1xf32>
    %cst = arith.constant dense<0.000000e+00> : vector<64x512xf32>
    %7 = tpu.matmul %5, %4, %cst {dimension_numbers = #tpu.dot_dimension_numbers<[1], [0], [0], [1], [0, 0, 1, 1], [], []>} : vector<64x7xf32>, vector<7x512xf32>, vector<64x512xf32> -> vector<64x512xf32>
    %8 = vector.broadcast %6 : vector<64x1xf32> to vector<64x512xf32>
    %9 = arith.addf %7, %8 : vector<64x512xf32>
    %cst_9 = arith.constant 0.000000e+00 : f32
    %10 = vector.broadcast %cst_9 : f32 to vector<64x512xf32>
    %11 = arith.maximumf %9, %10 : vector<64x512xf32>
    %c0_10 = arith.constant 0 : index
    %c0_11 = arith.constant 0 : index
    %12 = vector.load %arg6[%c0_10, %c0_11] : memref<64x64xf32, #tpu.memory_space<vmem>>, vector<64x64xf32>
    %c0_12 = arith.constant 0 : index
    %c0_13 = arith.constant 0 : index
    %13 = vector.load %arg7[%c0_12, %c0_13] : memref<64x1xf32, #tpu.memory_space<vmem>>, vector<64x1xf32>
    %cst_14 = arith.constant dense<0.000000e+00> : vector<64x512xf32>
    %14 = tpu.matmul %12, %11, %cst_14 {dimension_numbers = #tpu.dot_dimension_numbers<[1], [0], [0], [1], [0, 0, 1, 1], [], []>} : vector<64x64xf32>, vector<64x512xf32>, vector<64x512xf32> -> vector<64x512xf32>
    %15 = vector.broadcast %13 : vector<64x1xf32> to vector<64x512xf32>
    %16 = arith.addf %14, %15 : vector<64x512xf32>
    %cst_15 = arith.constant 0.000000e+00 : f32
    %17 = vector.broadcast %cst_15 : f32 to vector<64x512xf32>
    %18 = arith.maximumf %16, %17 : vector<64x512xf32>
    %c0_16 = arith.constant 0 : index
    %c0_17 = arith.constant 0 : index
    %19 = vector.load %arg8[%c0_16, %c0_17] : memref<32x64xf32, #tpu.memory_space<vmem>>, vector<32x64xf32>
    %c0_18 = arith.constant 0 : index
    %c0_19 = arith.constant 0 : index
    %20 = vector.load %arg9[%c0_18, %c0_19] : memref<32x1xf32, #tpu.memory_space<vmem>>, vector<32x1xf32>
    %cst_20 = arith.constant dense<0.000000e+00> : vector<32x512xf32>
    %21 = tpu.matmul %19, %18, %cst_20 {dimension_numbers = #tpu.dot_dimension_numbers<[1], [0], [0], [1], [0, 0, 1, 1], [], []>} : vector<32x64xf32>, vector<64x512xf32>, vector<32x512xf32> -> vector<32x512xf32>
    %22 = vector.broadcast %20 : vector<32x1xf32> to vector<32x512xf32>
    %23 = arith.addf %21, %22 : vector<32x512xf32>
    %24 = vector.extract_strided_slice %23 {offsets = [0, 0], sizes = [16, 512], strides = [1, 1]} : vector<32x512xf32> to vector<16x512xf32>
    %25 = vector.extract_strided_slice %23 {offsets = [16, 0], sizes = [16, 512], strides = [1, 1]} : vector<32x512xf32> to vector<16x512xf32>
    %26 = arith.mulf %24, %25 : vector<16x512xf32>
    %c0_i32 = arith.constant 0 : i32
    %27 = arith.cmpi eq, %arg1, %c0_i32 : i32
    %28 = arith.extui %27 : i1 to i32
    %c0_i32_21 = arith.constant 0 : i32
    %29 = arith.cmpi ne, %28, %c0_i32_21 : i32
    scf.if %29 {
      %cst_29 = arith.constant 0.000000e+00 : f32
      %38 = vector.broadcast %cst_29 : f32 to vector<16x1xf32>
      %c0_30 = arith.constant 0 : index
      %c0_31 = arith.constant 0 : index
      %39 = vector.load %arg17[%c0_30, %c0_31] : memref<16x1xf32, #tpu.memory_space<vmem>>, vector<16x1xf32>
      tpu.vector_store %arg17[%c0_30, %c0_31], %38 {strides = array<i32>} : memref<16x1xf32, #tpu.memory_space<vmem>>, vector<16x1xf32>,
    } else {
    }
    %c0_22 = arith.constant 0 : index
    %c0_23 = arith.constant 0 : index
    %30 = vector.load %arg17[%c0_22, %c0_23] : memref<16x1xf32, #tpu.memory_space<vmem>>, vector<16x1xf32>
    %cst_24 = arith.constant dense<0.000000e+00> : vector<16xf32>
    %31 = vector.multi_reduction <add>, %26, %cst_24 [1] : vector<16x512xf32> to vector<16xf32>
    %32 = vector.shape_cast %31 : vector<16xf32> to vector<16x1xf32>
    %33 = arith.addf %30, %32 : vector<16x1xf32>
    %c0_25 = arith.constant 0 : index
    %c0_26 = arith.constant 0 : index
    %34 = vector.load %arg17[%c0_25, %c0_26] : memref<16x1xf32, #tpu.memory_space<vmem>>, vector<16x1xf32>
    tpu.vector_store %arg17[%c0_25, %c0_26], %33 {strides = array<i32>} : memref<16x1xf32, #tpu.memory_space<vmem>>, vector<16x1xf32>,
    %c0_i32_27 = arith.constant 0 : i32
    %35 = arith.cmpi eq, %arg1, %c0_i32_27 : i32
    %36 = arith.extui %35 : i1 to i32
    %c0_i32_28 = arith.constant 0 : i32
    %37 = arith.cmpi ne, %36, %c0_i32_28 : i32
    scf.if %37 {
      %c0_29 = arith.constant 0 : index
      %c0_30 = arith.constant 0 : index
      %38 = vector.load %arg17[%c0_29, %c0_30] : memref<16x1xf32, #tpu.memory_space<vmem>>, vector<16x1xf32>
      %cst_31 = arith.constant 0.001953125 : f32
      %39 = vector.broadcast %cst_31 : f32 to vector<16x1xf32>
      %40 = arith.mulf %38, %39 : vector<16x1xf32>
      %c0_32 = arith.constant 0 : index
      %c0_33 = arith.constant 0 : index
      %41 = vector.load %arg10[%c0_32, %c0_33] : memref<32x16xf32, #tpu.memory_space<vmem>>, vector<32x16xf32>
      %c0_34 = arith.constant 0 : index
      %c0_35 = arith.constant 0 : index
      %42 = vector.load %arg11[%c0_34, %c0_35] : memref<32x1xf32, #tpu.memory_space<vmem>>, vector<32x1xf32>
      %cst_36 = arith.constant dense<0.000000e+00> : vector<32x1xf32>
      %43 = tpu.matmul %41, %40, %cst_36 {dimension_numbers = #tpu.dot_dimension_numbers<[1], [0], [0], [1], [0, 0, 1, 1], [], []>} : vector<32x16xf32>, vector<16x1xf32>, vector<32x1xf32> -> vector<32x1xf32>
      %44 = arith.addf %43, %42 : vector<32x1xf32>
      %cst_37 = arith.constant 0.000000e+00 : f32
      %45 = vector.broadcast %cst_37 : f32 to vector<32x1xf32>
      %46 = arith.maximumf %44, %45 : vector<32x1xf32>
      %c0_38 = arith.constant 0 : index
      %c0_39 = arith.constant 0 : index
      %47 = vector.load %arg12[%c0_38, %c0_39] : memref<32x32xf32, #tpu.memory_space<vmem>>, vector<32x32xf32>
      %c0_40 = arith.constant 0 : index
      %c0_41 = arith.constant 0 : index
      %48 = vector.load %arg13[%c0_40, %c0_41] : memref<32x1xf32, #tpu.memory_space<vmem>>, vector<32x1xf32>
      %cst_42 = arith.constant dense<0.000000e+00> : vector<32x1xf32>
      %49 = tpu.matmul %47, %46, %cst_42 {dimension_numbers = #tpu.dot_dimension_numbers<[1], [0], [0], [1], [0, 0, 1, 1], [], []>} : vector<32x32xf32>, vector<32x1xf32>, vector<32x1xf32> -> vector<32x1xf32>
      %50 = arith.addf %49, %48 : vector<32x1xf32>
      %cst_43 = arith.constant 0.000000e+00 : f32
      %51 = vector.broadcast %cst_43 : f32 to vector<32x1xf32>
      %52 = arith.maximumf %50, %51 : vector<32x1xf32>
      %c0_44 = arith.constant 0 : index
      %c0_45 = arith.constant 0 : index
      %53 = vector.load %arg14[%c0_44, %c0_45] : memref<32x32xf32, #tpu.memory_space<vmem>>, vector<32x32xf32>
      %c0_46 = arith.constant 0 : index
      %c0_47 = arith.constant 0 : index
      %54 = vector.load %arg15[%c0_46, %c0_47] : memref<32x1xf32, #tpu.memory_space<vmem>>, vector<32x1xf32>
      %cst_48 = arith.constant dense<0.000000e+00> : vector<32x1xf32>
      %55 = tpu.matmul %53, %52, %cst_48 {dimension_numbers = #tpu.dot_dimension_numbers<[1], [0], [0], [1], [0, 0, 1, 1], [], []>} : vector<32x32xf32>, vector<32x1xf32>, vector<32x1xf32> -> vector<32x1xf32>
      %56 = arith.addf %55, %54 : vector<32x1xf32>
      %c0_49 = arith.constant 0 : index
      %c0_50 = arith.constant 0 : index
      %c0_51 = arith.constant 0 : index
      %57 = vector.load %arg16[%c0_49, %c0_50, %c0_51] : memref<1x32x1xf32, #tpu.memory_space<vmem>>, vector<1x32x1xf32>
      %58 = vector.shape_cast %57 : vector<1x32x1xf32> to vector<32x1xf32>
      %59 = vector.shape_cast %56 : vector<32x1xf32> to vector<1x32x1xf32>
      tpu.vector_store %arg16[%c0_49, %c0_50, %c0_51], %59 {strides = array<i32>} : memref<1x32x1xf32, #tpu.memory_space<vmem>>, vector<1x32x1xf32>,
    } else {
    }
    return
  }
  func.func @transform_0(%arg0: i32, %arg1: i32) -> (i32, i32, i32) {
    %c0_i32 = arith.constant 0 : i32
    %c0_i32_0 = arith.constant 0 : i32
    return %arg0, %c0_i32, %arg1 : i32, i32, i32
  }
  func.func @transform_1(%arg0: i32, %arg1: i32) -> (i32, i32, i32) {
    %c0_i32 = arith.constant 0 : i32
    %c0_i32_0 = arith.constant 0 : i32
    return %arg0, %c0_i32, %arg1 : i32, i32, i32
  }
  func.func @transform_2(%arg0: i32, %arg1: i32) -> (i32, i32) {
    %c0_i32 = arith.constant 0 : i32
    %c0_i32_0 = arith.constant 0 : i32
    %c0_i32_1 = arith.constant 0 : i32
    return %c0_i32, %c0_i32_0 : i32, i32
  }
  func.func @transform_3(%arg0: i32, %arg1: i32) -> (i32, i32) {
    %c0_i32 = arith.constant 0 : i32
    %c0_i32_0 = arith.constant 0 : i32
    %c0_i32_1 = arith.constant 0 : i32
    return %c0_i32, %c0_i32_0 : i32, i32
  }
  func.func @transform_4(%arg0: i32, %arg1: i32) -> (i32, i32) {
    %c0_i32 = arith.constant 0 : i32
    %c0_i32_0 = arith.constant 0 : i32
    %c0_i32_1 = arith.constant 0 : i32
    return %c0_i32, %c0_i32_0 : i32, i32
  }
  func.func @transform_5(%arg0: i32, %arg1: i32) -> (i32, i32) {
    %c0_i32 = arith.constant 0 : i32
    %c0_i32_0 = arith.constant 0 : i32
    %c0_i32_1 = arith.constant 0 : i32
    return %c0_i32, %c0_i32_0 : i32, i32
  }
  func.func @transform_6(%arg0: i32, %arg1: i32) -> (i32, i32) {
    %c0_i32 = arith.constant 0 : i32
    %c0_i32_0 = arith.constant 0 : i32
    %c0_i32_1 = arith.constant 0 : i32
    return %c0_i32, %c0_i32_0 : i32, i32
  }
  func.func @transform_7(%arg0: i32, %arg1: i32) -> (i32, i32) {
    %c0_i32 = arith.constant 0 : i32
    %c0_i32_0 = arith.constant 0 : i32
    %c0_i32_1 = arith.constant 0 : i32
    return %c0_i32, %c0_i32_0 : i32, i32
  }
  func.func @transform_8(%arg0: i32, %arg1: i32) -> (i32, i32) {
    %c0_i32 = arith.constant 0 : i32
    %c0_i32_0 = arith.constant 0 : i32
    %c0_i32_1 = arith.constant 0 : i32
    return %c0_i32, %c0_i32_0 : i32, i32
  }
  func.func @transform_9(%arg0: i32, %arg1: i32) -> (i32, i32) {
    %c0_i32 = arith.constant 0 : i32
    %c0_i32_0 = arith.constant 0 : i32
    %c0_i32_1 = arith.constant 0 : i32
    return %c0_i32, %c0_i32_0 : i32, i32
  }
  func.func @transform_10(%arg0: i32, %arg1: i32) -> (i32, i32) {
    %c0_i32 = arith.constant 0 : i32
    %c0_i32_0 = arith.constant 0 : i32
    %c0_i32_1 = arith.constant 0 : i32
    return %c0_i32, %c0_i32_0 : i32, i32
  }
  func.func @transform_11(%arg0: i32, %arg1: i32) -> (i32, i32) {
    %c0_i32 = arith.constant 0 : i32
    %c0_i32_0 = arith.constant 0 : i32
    %c0_i32_1 = arith.constant 0 : i32
    return %c0_i32, %c0_i32_0 : i32, i32
  }
  func.func @transform_12(%arg0: i32, %arg1: i32) -> (i32, i32) {
    %c0_i32 = arith.constant 0 : i32
    %c0_i32_0 = arith.constant 0 : i32
    %c0_i32_1 = arith.constant 0 : i32
    return %c0_i32, %c0_i32_0 : i32, i32
  }
  func.func @transform_13(%arg0: i32, %arg1: i32) -> (i32, i32) {
    %c0_i32 = arith.constant 0 : i32
    %c0_i32_0 = arith.constant 0 : i32
    %c0_i32_1 = arith.constant 0 : i32
    return %c0_i32, %c0_i32_0 : i32, i32
  }
  func.func @transform_14(%arg0: i32, %arg1: i32) -> (i32, i32, i32) {
    %c0_i32 = arith.constant 0 : i32
    %c0_i32_0 = arith.constant 0 : i32
    %c0_i32_1 = arith.constant 0 : i32
    return %arg0, %c0_i32, %c0_i32_0 : i32, i32, i32
  }
}

</mosaic_0001>

<bundles_post_ra>
// kernel: tpu_custom_call.1
= control target key start
LH: loop header
LB: loop body
LE: loop exit
PB: predicated region body
PF: predicated region fallthrough
CT: control target
= control target key end

     0   :  { %s1823_s29 = smov 0   ;;  %s1825_s30 = smov 0   ;;  %s2333_s0 = inlined_call_operand.vmem [shape: f32[2,4,512], index: 0, kind: input, shape index: {}]   ;;  %s2334_s1 = inlined_call_operand.vmem [shape: f32[2,3,512], index: 1, kind: input, shape index: {}]   ;;  %s2335_s2 = inlined_call_operand.vmem [shape: f32[64,7], index: 2, kind: input, shape index: {}]   ;;  %s2336_s3 = inlined_call_operand.vmem [shape: f32[64,1], index: 3, kind: input, shape index: {}]   ;;  %s2337_s4 = inlined_call_operand.vmem [shape: f32[64,64], index: 4, kind: input, shape index: {}]   ;;  %s2338_s5 = inlined_call_operand.vmem [shape: f32[64,1], index: 5, kind: input, shape index: {}]   ;;  %s2339_s6 = inlined_call_operand.vmem [shape: f32[32,64], index: 6, kind: input, shape index: {}]   ;;  %s2340_s7 = inlined_call_operand.vmem [shape: f32[32,1], index: 7, kind: input, shape index: {}]   ;;  %s2341_s8 = inlined_call_operand.vmem [shape: f32[32,16], index: 8, kind: input, shape index: {}]   ;;  %s2342_s9 = inlined_call_operand.vmem [shape: f32[32,1], index: 9, kind: input, shape index: {}]   ;;  %s2343_s10 = inlined_call_operand.vmem [shape: f32[32,32], index: 10, kind: input, shape index: {}]   ;;  %s2344_s11 = inlined_call_operand.vmem [shape: f32[32,1], index: 11, kind: input, shape index: {}]   ;;  %s2345_s12 = inlined_call_operand.vmem [shape: f32[32,32], index: 12, kind: input, shape index: {}]   ;;  %s2346_s13 = inlined_call_operand.vmem [shape: f32[32,1], index: 13, kind: input, shape index: {}]   ;;  %s2347_s14 = inlined_call_operand.vmem [shape: f32[2,32,1], index: 14, kind: output, shape index: {}]  }
   0x1   :  { %s1827_s15 = smov 0  }
   0x2 LB: > { %s36_s16 = sadd.s32 1, %s1740_s30  ;;  %p1582_p0 = scmp.ge.s32.totalorder %s1744_s15, 1  ;;  %s1744_s15 = sphi %s1827_s15, %s24_s15   ;;  %s1740_s30 = sphi %s1825_s30, %s2349_s30   ;;  %s1736_s29 = sphi %s1823_s29, %s2348_s29  }
   0x3   : > { %p38_p1 = scmp.ge.s32.totalorder %s36_s16, 2  ;;  %p448_p2 = scmp.lt.s32.totalorder %s1744_s15, 3 }
   0x5   : > { %s2351_s16 = smov (%p38_p1, %s36_s16), 0  ;;  %p449_p3 = pnand %p1582_p0, %p448_p2 }
   0x6   : > { %p508_p4 = scmp.lt.s32.totalorder (!%p449_p3), %s1736_s29, 1 }
   0x7   : > { %452 = sbr.rel (%p449_p3) target bundleno = 1249 (0x4e1), region = 76 }
   0xc   : > { %s2353_s29 = smov (!%p508_p4, %s1736_s29), 1  ;;  %v1746_v0 = vmov 0   ;;  %v583_v3 = vld [vmem:[%s2336_s3 + $0x38] sm:$0xff]  ;;  %v581_v10 = vld [vmem:[%s2336_s3 + $0x28] sm:$0xff]  ;;  %vm563_vm0 = vcmask 1043456   ;;  %vm649_vm1 = vcmask 1046528  }
   0xd   : > { %s1687_s17 = sshll.u32 %s2353_s29, 4  ;;  %1719 = vset.pattern.permute.xlu0 %v1746_v0  ;;  %1720 = vset.pattern.permute.xlu1 %v1746_v0  ;;  %v568_v11 = vld [vmem:[%s2335_s2] sm:$0xff]  ;;  %vm624_vm2 = vcmask 56320   ;;  %v1864_v16 = vld [vmem:[%s2335_s2 + $0x38] sm:$0xff]  ;;  %v569_v20 = vld [vmem:[%s2335_s2 + $0x8] sm:$0xff]  ;;  %vm914_vm3 = vcmask 523264  }
   0xe   : > { %s515_s20 = scalar_lea.vmem %s2333_s0, %s1687_s17  ;;  %1721 = vset.pattern.permute.xlu2 %v1746_v0  ;;  %s525_s23 = scalar_lea.vmem %s2334_s1, %s1687_s17  ;;  %621 = vperm.xlu0 %1719, %v583_v3   ;;  %v580_v19 = vld [vmem:[%s2336_s3 + $0x20] sm:$0xff]  ;;  %v582_v23 = vld [vmem:[%s2336_s3 + $0x30] sm:$0xff]  ;;  %v577_v26 = vld [vmem:[%s2336_s3 + $0x8] sm:$0xff]  ;;  %vm1303_vm4 = vcmask 7168   ;;  %vm1338_vm5 = vcmask 130048   ;;  %vm1392_vm6 = vcmask 261120  }
   0xf   : > { %v532_v1 = vld [vmem:[%s515_s20] sm:$0xff]  ;;  %v533_v2 = vld [vmem:[%s515_s20 + $0x8] sm:$0xff]  ;;  %611 = vperm.xlu1 %1720, %v581_v10   ;;  %v570_v25 = vld [vmem:[%s2335_s2 + $0x10] sm:$0xff]  ;;  %s1689_s24 = sshll.u32 %s2353_s29, 5 }
  0x10   : > { %538 = vst [vmem:[#allocation1] ss:$2 sm:$0xff] %v532_v1  ;;  %v534_v4 = vld [vmem:[%s525_s23] sm:$0x77]  ;;  %v535_v5 = vld [vmem:[%s525_s23 + $0x8] sm:$0x77]  ;;  %s531_s17 = scalar_lea.vmem %s2347_s14, %s1689_s24 }
  0x11   : > { %540 = vst [vmem:[#allocation1 + $0x10] ss:$2 sm:$0xff] %v533_v2  ;;  %v576_v24 = vld [vmem:[%s2336_s3] sm:$0xff]  ;;  %v571_v27 = vld [vmem:[%s2335_s2 + $0x18] sm:$0xff]  ;;  %v872_v29 = vld [vmem:[%s2338_s5 + $0x30] sm:$0xff] }
  0x12   : > { %v572_v28 = vld [vmem:[%s2335_s2 + $0x20] sm:$0xff]  ;;  %v871_v30 = vld [vmem:[%s2338_s5 + $0x28] sm:$0xff]  ;;  %v579_v32 = vld [vmem:[%s2336_s3 + $0x18] sm:$0xff] }
  0x13   : > { %v573_v31 = vld [vmem:[%s2335_s2 + $0x28] sm:$0xff]  ;;  %v869_v33 = vld [vmem:[%s2338_s5 + $0x18] sm:$0xff]  ;;  %v868_v34 = vld [vmem:[%s2338_s5 + $0x10] sm:$0xff]  ;;  %601 = vperm.xlu2 %1721, %v579_v32  }
  0x14   : > { %v574_v35 = vld [vmem:[%s2335_s2 + $0x30] sm:$0xff]  ;;  %v866_v37 = vld [vmem:[%s2338_s5] sm:$0xff]  ;;  %v1140_v38 = vld [vmem:[%s2340_s7 + $0x8] sm:$0xff] }
  0x15   : > { %v578_v36 = vld [vmem:[%s2336_s3 + $0x10] sm:$0xff]  ;;  %v1139_v39 = vld [vmem:[%s2340_s7] sm:$0xff]  ;;  %v873_v40 = vld [vmem:[%s2338_s5 + $0x38] sm:$0xff] }
  0x16   : > { %616 = vperm.xlu0 %1719, %v582_v23   ;;  %v1141_v41 = vld [vmem:[%s2340_s7 + $0x10] sm:$0xff]  ;;  %v870_v42 = vld [vmem:[%s2338_s5 + $0x20] sm:$0xff]  ;;  %v867_v43 = vld [vmem:[%s2338_s5 + $0x8] sm:$0xff] }
  0x17   : > { %v541_v6 = vld.sshfl [vmem:[#allocation1] sm:$0xff pattern:$0x75316420]  ;;  %v542_v7 = vld.sshfl [vmem:[#allocation1 + $0x8] sm:$0xff pattern:$0x75316420]  ;;  %606 = vperm.xlu1 %1720, %v580_v19  }
  0x18   : > { %552 = vst [vmem:[#allocation1 + $0x1] ss:$2 sm:$0xff] %v534_v4  ;;  %v543_v8 = vld.sshfl [vmem:[#allocation1 + $0x10] sm:$0xff pattern:$0x75316420]  ;;  %v1142_v44 = vld [vmem:[%s2340_s7 + $0x18] sm:$0xff] }
  0x19   : > { %v544_v9 = vld.sshfl [vmem:[#allocation1 + $0x18] sm:$0xff pattern:$0x75316420] }
  0x1a   : > { %554 = vst [vmem:[#allocation1 + $0x11] ss:$2 sm:$0xff] %v535_v5 }
  0x1b   : > { %596 = vperm.xlu2 %1721, %v578_v36  }
  0x1e   : > { %591 = vperm.xlu0 %1719, %v577_v26  }
  0x1f   : > { %v555_v12 = vld.sshfl [vmem:[#allocation1] sm:$0xff pattern:$0x75316420]  ;;  %v556_v13 = vld.sshfl [vmem:[#allocation1 + $0x8] sm:$0xff pattern:$0x75316420]  ;;  %586 = vperm.xlu1 %1720, %v576_v24  }
  0x20   : > { %v564_v14 = vsel %vm563_vm0, %v541_v6, %v555_v12  ;;  %v565_v15 = vsel %vm563_vm0, %v542_v7, %v556_v13 }
  0x21   : > { %1589 = vmatpush.msk.msra.mxu0 %vm649_vm1, %v564_v14  ;;  %1690 = vmatpush.msk.msra.mxu3 %vm649_vm1, %v564_v14  ;;  %v557_v17 = vld.sshfl [vmem:[#allocation1 + $0x10] sm:$0xff pattern:$0x75316420]  ;;  %v558_v21 = vld.sshfl [vmem:[#allocation1 + $0x18] sm:$0xff pattern:$0x75316420] }
  0x22   : > { %1598 = vmatpush.msk.msra.mxu1 %vm649_vm1, %v565_v15  ;;  %v566_v18 = vsel %vm563_vm0, %v543_v8, %v557_v17  ;;  %1590 = vmatmul.msk.f32.vlgmr.msra.gmra.mxu0 %vm624_vm2, %v568_v11  ;;  %v567_v22 = vsel %vm563_vm0, %v544_v9, %v558_v21 }
  0x23   : > { %1607 = vmatpush.msk.msra.mxu2 %vm649_vm1, %v566_v18  ;;  %1597 = vmatmul.msk.f32.vlgmr.msra.gmra.mxu3 %vm624_vm2, %v1864_v16 }
  0x24   : > { %1599 = vmatmul.msk.f32.vlgmr.msra.gmra.mxu1 %vm624_vm2, %v568_v11  ;;  %1608 = vmatmul.msk.f32.vlgmr.msra.gmra.mxu2 %vm624_vm2, %v568_v11 }
  0x25   : > { %1691 = vmatpush.msk.msrb.mxu3 %vm649_vm1, %v565_v15  ;;  %911 = vperm.xlu2 %1721, %v873_v40  }
  0x26   : > { %906 = vperm.xlu0 %1719, %v872_v29  }
  0x27   : > { %1692 = vmatpush.msk.msra.mxu3 %vm649_vm1, %v566_v18  ;;  %901 = vperm.xlu1 %1720, %v871_v30  }
  0x2a   : > { %1591 = vmatmul.msk.f32.gmra.mxu0 %vm624_vm2, %v569_v20 }
  0x2b   : > { %1606 = vmatmul.msk.f32.vlgmr.msrb.gmra.mxu3 %vm624_vm2, %v1864_v16 }
  0x2c   : > { %1600 = vmatmul.msk.f32.gmra.mxu1 %vm624_vm2, %v569_v20  ;;  %1609 = vmatmul.msk.f32.gmra.mxu2 %vm624_vm2, %v569_v20 }
  0x2d   : > { %1616 = vmatpush.msk.msrb.mxu3 %vm649_vm1, %v567_v22  ;;  %896 = vperm.xlu2 %1721, %v870_v42  }
  0x2e   : > { %891 = vperm.xlu0 %1719, %v869_v33  }
  0x2f   : > { %886 = vperm.xlu1 %1720, %v868_v34  }
  0x32   : > { %1592 = vmatmul.msk.f32.gmra.mxu0 %vm624_vm2, %v570_v25 }
  0x33   : > { %1615 = vmatmul.msk.f32.vlgmr.msra.gmra.mxu3 %vm624_vm2, %v1864_v16 }
  0x34   : > { %1601 = vmatmul.msk.f32.gmra.mxu1 %vm624_vm2, %v570_v25  ;;  %1610 = vmatmul.msk.f32.gmra.mxu2 %vm624_vm2, %v570_v25 }
  0x35   : > { %881 = vperm.xlu2 %1721, %v867_v43  }
  0x36   : > { %876 = vperm.xlu0 %1719, %v866_v37  }
  0x37   : > { %1150 = vperm.xlu1 %1720, %v1140_v38  }
  0x3a   : > { %1593 = vmatmul.msk.f32.gmra.mxu0 %vm624_vm2, %v571_v27 }
  0x3b   : > { %1617 = vmatmul.msk.f32.vlgmr.msrb.gmra.mxu3 %vm624_vm2, %v568_v11 }
  0x3c   : > { %1602 = vmatmul.msk.f32.gmra.mxu1 %vm624_vm2, %v571_v27  ;;  %1611 = vmatmul.msk.f32.gmra.mxu2 %vm624_vm2, %v571_v27 }
  0x3d   : > { %1160 = vperm.xlu2 %1721, %v1142_v44  }
  0x3e   : > { %1145 = vperm.xlu0 %1719, %v1139_v39  }
  0x3f   : > { %1155 = vperm.xlu1 %1720, %v1141_v41  }
  0x42   : > { %1594 = vmatmul.msk.f32.gmra.mxu0 %vm624_vm2, %v572_v28 }
  0x43   : > { %1618 = vmatmul.msk.f32.gmra.mxu3 %vm624_vm2, %v569_v20 }
  0x44   : > { %1603 = vmatmul.msk.f32.gmra.mxu1 %vm624_vm2, %v572_v28  ;;  %1612 = vmatmul.msk.f32.gmra.mxu2 %vm624_vm2, %v572_v28 }
  0x4a   : > { %1595 = vmatmul.msk.f32.gmra.mxu0 %vm624_vm2, %v573_v31 }
  0x4b   : > { %1619 = vmatmul.msk.f32.gmra.mxu3 %vm624_vm2, %v570_v25 }
  0x4c   : > { %1604 = vmatmul.msk.f32.gmra.mxu1 %vm624_vm2, %v573_v31  ;;  %1613 = vmatmul.msk.f32.gmra.mxu2 %vm624_vm2, %v573_v31 }
  0x52   : > { %1596 = vmatmul.msk.f32.gmra.mxu0 %vm624_vm2, %v574_v35 }
  0x53   : > { %1620 = vmatmul.msk.f32.gmra.mxu3 %vm624_vm2, %v571_v27 }
  0x54   : > { %1605 = vmatmul.msk.f32.gmra.mxu1 %vm624_vm2, %v574_v35  ;;  %1614 = vmatmul.msk.f32.gmra.mxu2 %vm624_vm2, %v574_v35 }
  0x5b   : > { %1621 = vmatmul.msk.f32.gmra.mxu3 %vm624_vm2, %v572_v28 }
  0x63   : > { %1622 = vmatmul.msk.f32.gmra.mxu3 %vm624_vm2, %v573_v31 }
  0x6b   : > { %1623 = vmatmul.msk.f32.gmra.mxu3 %vm624_vm2, %v574_v35 }
  0x6d   : > { %v2008_v11 = vpop.permute.xlu2 %601 }
  0x73   : > { %1624 = vmatmul.msk.f32.gmra.mxu3 %vm624_vm2, %v1864_v16 }
  0x75   : > { %v2023_v29 = vpop.permute.xlu2 %596 }
  0x80   : > { %v1987_v47 = vpop.permute.xlu0 %621 }
  0x81   : > { %v2004_v6 = vpop.permute.xlu1 %611 }
  0x88   : > { %v2012_v13 = vpop.permute.xlu0 %616 }
  0x89   : > { %v2010_v12 = vpop.permute.xlu1 %606 }
  0x90   : > { %v2031_v39 = vpop.permute.xlu0 %591 }
  0x9f   : > { %v1983_v45 = vpop.f32.mrf.mxu0 }
  0xa1   : > { %v1985_v46 = vpop.f32.mrf.mxu1 }
  0xa6   : > { %v700_v48 = vpop.f32.mrf.mxu3 }
  0xa7   : > { %v701_v49 = vadd.f32 %v700_v48, %v1987_v47  ;;  %v1990_v50 = vpop.f32.mrf.mxu2  ;;  %v1992_v51 = vpop.f32.mrf.mxu0 }
  0xa8   : > { %v683_v44 = vadd.f32 %v1992_v51, %v2031_v39 }
  0xa9   : > { %v854_v52 = vmax.f32 %v701_v49, 0.0  ;;  %v1994_v53 = vpop.f32.mrf.mxu1  ;;  %v2039_v49 = vpop.permute.xlu1 %586 }
  0xaa   : > { %v724_v48 = vadd.f32 %v1994_v53, %v2031_v39  ;;  %v721_v51 = vadd.f32 %v1985_v46, %v2039_v49  ;;  %v830_v53 = vmax.f32 %v683_v44, 0.0 }
  0xab   : > { %947 = vmatpush.msrb.mxu0 %v854_v52 }
  0xae   : > { %v741_v54 = vpop.f32.mrf.mxu3 }
  0xaf   : > { %v742_v55 = vadd.f32 %v741_v54, %v1987_v47  ;;  %v1997_v56 = vpop.f32.mrf.mxu2  ;;  %v685_v57 = vpop.f32.mrf.mxu0 }
  0xb0   : > { %v686_v32 = vadd.f32 %v685_v57, %v2023_v29  ;;  %v765_v46 = vadd.f32 %v1997_v56, %v2031_v39  ;;  %v859_v56 = vld [vmem:[%s2337_s4 + $0x8] sm:$0xff] }
  0xb1   : > { %v855_v58 = vmax.f32 %v742_v55, 0.0  ;;  %v726_v59 = vpop.f32.mrf.mxu1 }
  0xb2   : > { %v727_v37 = vadd.f32 %v726_v59, %v2023_v29  ;;  %v834_v43 = vmax.f32 %v686_v32, 0.0 }
  0xb3   : > { %988 = vmatpush.msrb.mxu1 %v855_v58  ;;  %v680_v58 = vadd.f32 %v1983_v45, %v2039_v49  ;;  %v827_v45 = vmax.f32 %v721_v51, 0.0 }
  0xb4   : > { %v835_v55 = vmax.f32 %v727_v37, 0.0 }
  0xb6   : > { %v782_v60 = vpop.f32.mrf.mxu3 }
  0xb7   : > { %v1999_v61 = vpop.f32.mrf.mxu2  ;;  %v783_v62 = vadd.f32 %v782_v60, %v1987_v47  ;;  %v688_v63 = vpop.f32.mrf.mxu0 }
  0xb8   : > { %v689_v22 = vadd.f32 %v688_v63, %v2008_v11 }
  0xb9   : > { %v856_v0 = vmax.f32 %v783_v62, 0.0  ;;  %v729_v1 = vpop.f32.mrf.mxu1  ;;  %v831_v62 = vmax.f32 %v724_v48, 0.0 }
  0xba   : > { %v730_v31 = vadd.f32 %v729_v1, %v2008_v11  ;;  %v838_v36 = vmax.f32 %v689_v22, 0.0  ;;  %v826_v1 = vmax.f32 %v680_v58, 0.0 }
  0xbb   : > { %1029 = vmatpush.msrb.mxu2 %v856_v0  ;;  %v768_v0 = vadd.f32 %v1999_v61, %v2023_v29  ;;  %v762_v61 = vadd.f32 %v1990_v50, %v2039_v49 }
  0xbc   : > { %v839_v42 = vmax.f32 %v730_v31, 0.0 }
  0xbe   : > { %v2002_v2 = vpop.f32.mrf.mxu3 }
  0xbf   : > { %v770_v3 = vpop.f32.mrf.mxu2  ;;  %v691_v4 = vpop.f32.mrf.mxu0 }
  0xc0   : > { %v692_v18 = vadd.f32 %v691_v4, %v2010_v12  ;;  %v771_v57 = vadd.f32 %v770_v3, %v2008_v11  ;;  %v858_v3 = vld [vmem:[%s2337_s4] sm:$0xff]  ;;  %v836_v4 = vmax.f32 %v768_v0, 0.0 }
  0xc1   : > { %v732_v5 = vpop.f32.mrf.mxu1 }
  0xc2   : > { %v733_v23 = vadd.f32 %v732_v5, %v2010_v12  ;;  %v842_v27 = vmax.f32 %v692_v18, 0.0  ;;  %v840_v63 = vmax.f32 %v771_v57, 0.0  ;;  %v832_v5 = vmax.f32 %v765_v46, 0.0  ;;  %v861_v18 = vld [vmem:[%s2337_s4 + $0x18] sm:$0xff] }
  0xc4   : > { %v843_v33 = vmax.f32 %v733_v23, 0.0 }
  0xc6   : > { %v2006_v7 = vpop.f32.mrf.mxu3 }
  0xc7   : > { %v773_v8 = vpop.f32.mrf.mxu2  ;;  %v694_v9 = vpop.f32.mrf.mxu0 }
  0xc8   : > { %v695_v14 = vadd.f32 %v694_v9, %v2004_v6  ;;  %v774_v40 = vadd.f32 %v773_v8, %v2010_v12  ;;  %v828_v9 = vmax.f32 %v762_v61, 0.0 }
  0xc9   : > { %v735_v10 = vpop.f32.mrf.mxu1 }
  0xca   : > { %v736_v19 = vadd.f32 %v735_v10, %v2004_v6  ;;  %v846_v24 = vmax.f32 %v695_v14, 0.0  ;;  %v844_v59 = vmax.f32 %v774_v40, 0.0  ;;  %v860_v10 = vld [vmem:[%s2337_s4 + $0x10] sm:$0xff] }
  0xcc   : > { %v847_v28 = vmax.f32 %v736_v19, 0.0 }
  0xce   : > { %v2015_v15 = vpop.f32.mrf.mxu3 }
  0xcf   : > { %v776_v16 = vpop.f32.mrf.mxu2  ;;  %v697_v17 = vpop.f32.mrf.mxu0  ;;  %v809_v23 = vadd.f32 %v2015_v15, %v2023_v29 }
  0xd0   : > { %v698_v20 = vadd.f32 %v697_v17, %v2012_v13  ;;  %v777_v34 = vadd.f32 %v776_v16, %v2004_v6 }
  0xd1   : > { %v738_v21 = vpop.f32.mrf.mxu1  ;;  %v837_v15 = vmax.f32 %v809_v23, 0.0 }
  0xd2   : > { %v850_v25 = vmax.f32 %v698_v20, 0.0  ;;  %v739_v26 = vadd.f32 %v738_v21, %v2012_v13  ;;  %v848_v52 = vmax.f32 %v777_v34, 0.0 }
  0xd4   : > { %v851_v30 = vmax.f32 %v739_v26, 0.0  ;;  %948 = vmatpush.msrb.mxu0 %v850_v25 }
  0xd6   : > { %989 = vmatpush.msrb.mxu1 %v851_v30  ;;  %v2028_v35 = vpop.f32.mrf.mxu3  ;;  %949 = vmatpush.msrb.mxu0 %v846_v24 }
  0xd7   : > { %v779_v38 = vpop.f32.mrf.mxu2 }
  0xd8   : > { %v780_v41 = vadd.f32 %v779_v38, %v2012_v13  ;;  %990 = vmatpush.msrb.mxu1 %v847_v28  ;;  %950 = vmatpush.msrb.mxu0 %v842_v27  ;;  %v863_v28 = vld [vmem:[%s2337_s4 + $0x28] sm:$0xff] }
  0xda   : > { %v852_v54 = vmax.f32 %v780_v41, 0.0  ;;  %991 = vmatpush.msrb.mxu1 %v843_v33  ;;  %951 = vmatpush.msrb.mxu0 %v838_v36 }
  0xdc   : > { %992 = vmatpush.msrb.mxu1 %v839_v42  ;;  %1030 = vmatpush.msrb.mxu2 %v852_v54 }
  0xdd   : > { %952 = vmatpush.msrb.mxu0 %v834_v43 }
  0xde   : > { %993 = vmatpush.msrb.mxu1 %v835_v55  ;;  %1031 = vmatpush.msrb.mxu2 %v848_v52  ;;  %v814_v60 = vpop.f32.mrf.mxu3  ;;  %v2136_v52 = vpop.permute.xlu0 %906 }
  0xdf   : > { %953 = vmatpush.msrb.mxu0 %v830_v53  ;;  %v815_v21 = vadd.f32 %v814_v60, %v2010_v12  ;;  %v806_v12 = vadd.f32 %v2006_v7, %v2031_v39  ;;  %v865_v7 = vld [vmem:[%s2337_s4 + $0x38] sm:$0xff] }
  0xe0   : > { %994 = vmatpush.msrb.mxu1 %v831_v62  ;;  %1032 = vmatpush.msrb.mxu2 %v844_v59  ;;  %v2140_v59 = vpop.permute.xlu1 %901 }
  0xe1   : > { %954 = vmatpush.msrb.mxu0 %v826_v1  ;;  %v845_v24 = vmax.f32 %v815_v21, 0.0  ;;  %v833_v26 = vmax.f32 %v806_v12, 0.0 }
  0xe2   : > { %995 = vmatpush.msrb.mxu1 %v827_v45  ;;  %1033 = vmatpush.msrb.mxu2 %v840_v63 }
  0xe3   : > { %1625 = vmatmul.msk.f32.vlgmr.msrb.gmra.mxu0 %vm914_vm3, %v858_v3  ;;  %1633 = vmatmul.msk.f32.vlgmr.msrb.gmra.mxu1 %vm914_vm3, %v858_v3 }
  0xe4   : > { %1034 = vmatpush.msrb.mxu2 %v836_v4 }
  0xe6   : > { %1035 = vmatpush.msrb.mxu2 %v832_v5  ;;  %v817_v8 = vpop.f32.mrf.mxu3  ;;  %v2146_v63 = vpop.permute.xlu0 %891 }
  0xe7   : > { %v818_v20 = vadd.f32 %v817_v8, %v2004_v6  ;;  %v862_v6 = vld [vmem:[%s2337_s4 + $0x20] sm:$0xff] }
  0xe8   : > { %1036 = vmatpush.msrb.mxu2 %v828_v9 }
  0xe9   : > { %1641 = vmatmul.msk.f32.vlgmr.msrb.gmra.mxu2 %vm914_vm3, %v858_v3 }
  0xeb   : > { %1626 = vmatmul.msk.f32.gmra.mxu0 %vm914_vm3, %v859_v56  ;;  %1634 = vmatmul.msk.f32.gmra.mxu1 %vm914_vm3, %v859_v56 }
  0xee   : > { %v820_v50 = vpop.f32.mrf.mxu3 }
  0xef   : > { %v821_v17 = vadd.f32 %v820_v50, %v2012_v13  ;;  %v849_v13 = vmax.f32 %v818_v20, 0.0  ;;  %v2160_v20 = vpop.permute.xlu1 %886 }
  0xf1   : > { %1642 = vmatmul.msk.f32.gmra.mxu2 %vm914_vm3, %v859_v56  ;;  %v853_v22 = vmax.f32 %v821_v17, 0.0 }
  0xf3   : > { %1627 = vmatmul.msk.f32.gmra.mxu0 %vm914_vm3, %v860_v10  ;;  %1635 = vmatmul.msk.f32.gmra.mxu1 %vm914_vm3, %v860_v10 }
  0xf6   : > { %v823_v14 = vpop.f32.mrf.mxu3 }
  0xf7   : > { %v824_v16 = vadd.f32 %v823_v14, %v1987_v47  ;;  %v812_v47 = vadd.f32 %v2028_v35, %v2008_v11  ;;  %v803_v11 = vadd.f32 %v2002_v2, %v2039_v49  ;;  %v864_v2 = vld [vmem:[%s2337_s4 + $0x30] sm:$0xff]  ;;  %v2134_v49 = vpop.permute.xlu2 %911 }
  0xf9   : > { %v857_v19 = vmax.f32 %v824_v16, 0.0  ;;  %1643 = vmatmul.msk.f32.gmra.mxu2 %vm914_vm3, %v860_v10  ;;  %v841_v25 = vmax.f32 %v812_v47, 0.0  ;;  %v829_v27 = vmax.f32 %v803_v11, 0.0 }
  0xfb   : > { %1628 = vmatmul.msk.f32.gmra.mxu0 %vm914_vm3, %v861_v18  ;;  %1636 = vmatmul.msk.f32.gmra.mxu1 %vm914_vm3, %v861_v18 }
  0xfc   : > { %1070 = vmatpush.msra.mxu3 %v857_v19 }
  0xfe   : > { %1071 = vmatpush.msra.mxu3 %v853_v22 }
  0xff   : > { %v2142_v51 = vpop.permute.xlu2 %896 }
 0x100   : > { %1072 = vmatpush.msra.mxu3 %v849_v13 }
 0x101   : > { %1644 = vmatmul.msk.f32.gmra.mxu2 %vm914_vm3, %v861_v18 }
 0x102   : > { %1073 = vmatpush.msra.mxu3 %v845_v24  ;;  %v2166_v24 = vpop.permute.xlu0 %876 }
 0x103   : > { %1629 = vmatmul.msk.f32.gmra.mxu0 %vm914_vm3, %v862_v6  ;;  %1637 = vmatmul.msk.f32.gmra.mxu1 %vm914_vm3, %v862_v6 }
 0x104   : > { %1074 = vmatpush.msra.mxu3 %v841_v25 }
 0x106   : > { %1075 = vmatpush.msra.mxu3 %v837_v15 }
 0x107   : > { %v2164_v23 = vpop.permute.xlu2 %881 }
 0x108   : > { %1076 = vmatpush.msra.mxu3 %v833_v26 }
 0x109   : > { %1645 = vmatmul.msk.f32.gmra.mxu2 %vm914_vm3, %v862_v6 }
 0x10a   : > { %1077 = vmatpush.msra.mxu3 %v829_v27 }
 0x10b   : > { %1630 = vmatmul.msk.f32.gmra.mxu0 %vm914_vm3, %v863_v28  ;;  %1638 = vmatmul.msk.f32.gmra.mxu1 %vm914_vm3, %v863_v28 }
 0x10c   : > { %1649 = vmatmul.msk.f32.vlgmr.msra.gmra.mxu3 %vm914_vm3, %v858_v3 }
 0x111   : > { %1646 = vmatmul.msk.f32.gmra.mxu2 %vm914_vm3, %v863_v28 }
 0x113   : > { %1631 = vmatmul.msk.f32.gmra.mxu0 %vm914_vm3, %v864_v2  ;;  %1639 = vmatmul.msk.f32.gmra.mxu1 %vm914_vm3, %v864_v2 }
 0x114   : > { %1650 = vmatmul.msk.f32.gmra.mxu3 %vm914_vm3, %v859_v56 }
 0x119   : > { %1647 = vmatmul.msk.f32.gmra.mxu2 %vm914_vm3, %v864_v2 }
 0x11b   : > { %1632 = vmatmul.msk.f32.gmra.mxu0 %vm914_vm3, %v865_v7  ;;  %1640 = vmatmul.msk.f32.gmra.mxu1 %vm914_vm3, %v865_v7 }
 0x11c   : > { %1651 = vmatmul.msk.f32.gmra.mxu3 %vm914_vm3, %v860_v10 }
 0x121   : > { %1648 = vmatmul.msk.f32.gmra.mxu2 %vm914_vm3, %v865_v7 }
 0x124   : > { %1652 = vmatmul.msk.f32.gmra.mxu3 %vm914_vm3, %v861_v18 }
 0x12c   : > { %1653 = vmatmul.msk.f32.gmra.mxu3 %vm914_vm3, %v862_v6 }
 0x134   : > { %1654 = vmatmul.msk.f32.gmra.mxu3 %vm914_vm3, %v863_v28 }
 0x13c   : > { %1655 = vmatmul.msk.f32.gmra.mxu3 %vm914_vm3, %v864_v2 }
 0x144   : > { %1656 = vmatmul.msk.f32.gmra.mxu3 %vm914_vm3, %v865_v7 }
 0x160   : > { %v2120_v29 = vpop.f32.mrf.mxu0  ;;  %v2122_v30 = vpop.f32.mrf.mxu1 }
 0x161   : > { %v957_v15 = vadd.f32 %v2120_v29, %v2166_v24  ;;  %v998_v27 = vadd.f32 %v2122_v30, %v2166_v24  ;;  %v2180_v30 = vld [vmem:[%s2339_s6] sm:$0xff] }
 0x168   : > { %v959_v31 = vpop.f32.mrf.mxu0  ;;  %v1000_v32 = vpop.f32.mrf.mxu1 }
 0x169   : > { %v960_v6 = vadd.f32 %v959_v31, %v2164_v23  ;;  %v1001_v12 = vadd.f32 %v1000_v32, %v2164_v23 }
 0x16b   : > { %v1107_v32 = vmax.f32 %v960_v6, 0.0 }
 0x16c   : > { %v2124_v33 = vpop.f32.mrf.mxu2 }
 0x170   : > { %v962_v34 = vpop.f32.mrf.mxu0  ;;  %v1003_v35 = vpop.f32.mrf.mxu1 }
 0x171   : > { %v963_v21 = vadd.f32 %v962_v34, %v2160_v20  ;;  %v1004_v22 = vadd.f32 %v1003_v35, %v2160_v20  ;;  %v1108_v34 = vmax.f32 %v1001_v12, 0.0 }
 0x173   : > { %v1111_v28 = vmax.f32 %v963_v21, 0.0  ;;  %v1112_v2 = vmax.f32 %v1004_v22, 0.0 }
 0x174   : > { %v2126_v36 = vpop.f32.mrf.mxu2 }
 0x178   : > { %v965_v37 = vpop.f32.mrf.mxu0  ;;  %v1006_v38 = vpop.f32.mrf.mxu1 }
 0x179   : > { %v966_v14 = vadd.f32 %v965_v37, %v2146_v63  ;;  %v1007_v16 = vadd.f32 %v1006_v38, %v2146_v63  ;;  %v1103_v38 = vmax.f32 %v957_v15, 0.0 }
 0x17b   : > { %v1115_v25 = vmax.f32 %v966_v14, 0.0  ;;  %v1116_v11 = vmax.f32 %v1007_v16, 0.0 }
 0x17c   : > { %v2128_v39 = vpop.f32.mrf.mxu2 }
 0x180   : > { %v968_v40 = vpop.f32.mrf.mxu0  ;;  %v1009_v41 = vpop.f32.mrf.mxu1 }
 0x181   : > { %v969_v9 = vadd.f32 %v968_v40, %v2142_v51  ;;  %v1010_v56 = vadd.f32 %v1009_v41, %v2142_v51  ;;  %v1104_v40 = vmax.f32 %v998_v27, 0.0  ;;  %v1146_v27 = vpop.permute.xlu0 %1145 }
 0x183   : > { %v1119_v47 = vmax.f32 %v969_v9, 0.0  ;;  %v1120_v13 = vmax.f32 %v1010_v56, 0.0 }
 0x184   : > { %v2130_v42 = vpop.f32.mrf.mxu2 }
 0x188   : > { %v971_v43 = vpop.f32.mrf.mxu0  ;;  %v1012_v44 = vpop.f32.mrf.mxu1 }
 0x189   : > { %v972_v46 = vadd.f32 %v971_v43, %v2140_v59  ;;  %v1013_v4 = vadd.f32 %v1012_v44, %v2140_v59  ;;  %v1048_v44 = vadd.f32 %v2130_v42, %v2146_v63  ;;  %v1136_v42 = vld [vmem:[%s2339_s6 + $0x8] sm:$0xff] }
 0x18b   : > { %v1123_v17 = vmax.f32 %v972_v46, 0.0  ;;  %v1124_v18 = vmax.f32 %v1013_v4, 0.0  ;;  %v1138_v46 = vld [vmem:[%s2339_s6 + $0x18] sm:$0xff] }
 0x18c   : > { %v2132_v48 = vpop.f32.mrf.mxu2 }
 0x18d   : > { %v1051_v41 = vadd.f32 %v2132_v48, %v2142_v51 }
 0x18f   : > { %v2138_v54 = vpop.f32.mrf.mxu3 }
 0x190   : > { %v974_v55 = vpop.f32.mrf.mxu0  ;;  %v1015_v57 = vpop.f32.mrf.mxu1 }
 0x191   : > { %v975_v0 = vadd.f32 %v974_v55, %v2136_v52  ;;  %v1016_v1 = vadd.f32 %v1015_v57, %v2136_v52  ;;  %v1045_v57 = vadd.f32 %v2128_v39, %v2160_v20 }
 0x193   : > { %v1127_v50 = vmax.f32 %v975_v0, 0.0  ;;  %v1128_v10 = vmax.f32 %v1016_v1, 0.0  ;;  %v1039_v0 = vadd.f32 %v2124_v33, %v2166_v24  ;;  %v1113_v1 = vmax.f32 %v1045_v57, 0.0 }
 0x194   : > { %v1053_v58 = vpop.f32.mrf.mxu2 }
 0x195   : > { %v1054_v29 = vadd.f32 %v1053_v58, %v2140_v59  ;;  %v1121_v58 = vmax.f32 %v1051_v41, 0.0  ;;  %v1105_v39 = vmax.f32 %v1039_v0, 0.0 }
 0x197   : > { %v2144_v53 = vpop.f32.mrf.mxu3  ;;  %v1125_v55 = vmax.f32 %v1054_v29, 0.0  ;;  %v1161_v29 = vpop.permute.xlu2 %1160 }
 0x198   : > { %v977_v60 = vpop.f32.mrf.mxu0  ;;  %v1018_v62 = vpop.f32.mrf.mxu1 }
 0x199   : > { %v978_v45 = vadd.f32 %v977_v60, %v2134_v49  ;;  %v1019_v3 = vadd.f32 %v1018_v62, %v2134_v49  ;;  %v1042_v60 = vadd.f32 %v2126_v36, %v2164_v23  ;;  %v1117_v62 = vmax.f32 %v1048_v44, 0.0 }
 0x19b   : > { %v1131_v61 = vmax.f32 %v978_v45, 0.0  ;;  %v1132_v5 = vmax.f32 %v1019_v3, 0.0  ;;  %v1109_v45 = vmax.f32 %v1042_v60, 0.0  ;;  %v1137_v3 = vld [vmem:[%s2339_s6 + $0x10] sm:$0xff] }
 0x19c   : > { %v1056_v8 = vpop.f32.mrf.mxu2 }
 0x19d   : > { %1183 = vmatpush.msra.mxu0 %v1131_v61  ;;  %1212 = vmatpush.msra.mxu1 %v1132_v5  ;;  %v1057_v31 = vadd.f32 %v1056_v8, %v2136_v52 }
 0x19f   : > { %v2158_v19 = vpop.f32.mrf.mxu3  ;;  %1184 = vmatpush.msra.mxu0 %v1127_v50  ;;  %1213 = vmatpush.msra.mxu1 %v1128_v10  ;;  %v1129_v43 = vmax.f32 %v1057_v31, 0.0 }
 0x1a0   : > { %v1086_v16 = vadd.f32 %v2158_v19, %v2160_v20 }
 0x1a1   : > { %1185 = vmatpush.msra.mxu0 %v1123_v17  ;;  %1214 = vmatpush.msra.mxu1 %v1124_v18 }
 0x1a3   : > { %1186 = vmatpush.msra.mxu0 %v1119_v47  ;;  %1215 = vmatpush.msra.mxu1 %v1120_v13  ;;  %v1151_v47 = vpop.permute.xlu1 %1150 }
 0x1a4   : > { %v1059_v26 = vpop.f32.mrf.mxu2 }
 0x1a5   : > { %v1060_v7 = vadd.f32 %v1059_v26, %v2134_v49  ;;  %1187 = vmatpush.msra.mxu0 %v1115_v25  ;;  %1216 = vmatpush.msra.mxu1 %v1116_v11 }
 0x1a7   : > { %v1133_v35 = vmax.f32 %v1060_v7, 0.0  ;;  %v1088_v37 = vpop.f32.mrf.mxu3  ;;  %1188 = vmatpush.msra.mxu0 %v1111_v28  ;;  %1217 = vmatpush.msra.mxu1 %v1112_v2 }
 0x1a8   : > { %v1089_v10 = vadd.f32 %v1088_v37, %v2146_v63 }
 0x1a9   : > { %1189 = vmatpush.msra.mxu0 %v1107_v32  ;;  %1218 = vmatpush.msra.mxu1 %v1108_v34 }
 0x1aa   : > { %1241 = vmatpush.msra.mxu2 %v1133_v35 }
 0x1ab   : > { %1190 = vmatpush.msra.mxu0 %v1103_v38  ;;  %1219 = vmatpush.msra.mxu1 %v1104_v40  ;;  %v1156_v25 = vpop.permute.xlu1 %1155 }
 0x1ac   : > { %1242 = vmatpush.msra.mxu2 %v1129_v43  ;;  %1657 = vmatmul.msk.f32.vlgmr.msra.gmra.mxu0 %vm914_vm3, %v2180_v30 }
 0x1ad   : > { %1661 = vmatmul.msk.f32.vlgmr.msra.gmra.mxu1 %vm914_vm3, %v2180_v30 }
 0x1ae   : > { %1243 = vmatpush.msra.mxu2 %v1125_v55 }
 0x1af   : > { %v1091_v48 = vpop.f32.mrf.mxu3 }
 0x1b0   : > { %1244 = vmatpush.msra.mxu2 %v1121_v58  ;;  %v1092_v56 = vadd.f32 %v1091_v48, %v2142_v51  ;;  %v1114_v51 = vmax.f32 %v1086_v16, 0.0 }
 0x1b2   : > { %1245 = vmatpush.msra.mxu2 %v1117_v62  ;;  %v1122_v17 = vmax.f32 %v1092_v56, 0.0 }
 0x1b4   : > { %1246 = vmatpush.msra.mxu2 %v1113_v1  ;;  %1658 = vmatmul.msk.f32.gmra.mxu0 %vm914_vm3, %v1136_v42 }
 0x1b5   : > { %1662 = vmatmul.msk.f32.gmra.mxu1 %vm914_vm3, %v1136_v42 }
 0x1b6   : > { %1247 = vmatpush.msra.mxu2 %v1109_v45 }
 0x1b7   : > { %v1094_v36 = vpop.f32.mrf.mxu3 }
 0x1b8   : > { %1248 = vmatpush.msra.mxu2 %v1105_v39  ;;  %v1095_v8 = vadd.f32 %v1094_v36, %v2140_v59  ;;  %v1080_v59 = vadd.f32 %v2138_v54, %v2166_v24 }
 0x1b9   : > { %1665 = vmatmul.msk.f32.vlgmr.msra.gmra.mxu2 %vm914_vm3, %v2180_v30 }
 0x1ba   : > { %v1126_v14 = vmax.f32 %v1095_v8, 0.0  ;;  %v1106_v18 = vmax.f32 %v1080_v59, 0.0 }
 0x1bc   : > { %1659 = vmatmul.msk.f32.gmra.mxu0 %vm914_vm3, %v1137_v3 }
 0x1bd   : > { %1663 = vmatmul.msk.f32.gmra.mxu1 %vm914_vm3, %v1137_v3 }
 0x1bf   : > { %v1097_v33 = vpop.f32.mrf.mxu3 }
 0x1c0   : > { %v1098_v61 = vadd.f32 %v1097_v33, %v2136_v52  ;;  %v1118_v52 = vmax.f32 %v1089_v10, 0.0 }
 0x1c1   : > { %1666 = vmatmul.msk.f32.gmra.mxu2 %vm914_vm3, %v1136_v42 }
 0x1c2   : > { %v1130_v50 = vmax.f32 %v1098_v61, 0.0 }
 0x1c4   : > { %1660 = vmatmul.msk.f32.gmra.mxu0 %vm914_vm3, %v1138_v46 }
 0x1c5   : > { %1664 = vmatmul.msk.f32.gmra.mxu1 %vm914_vm3, %v1138_v46 }
 0x1c7   : > { %v1100_v4 = vpop.f32.mrf.mxu3 }
 0x1c8   : > { %v1101_v5 = vadd.f32 %v1100_v4, %v2134_v49  ;;  %v1083_v49 = vadd.f32 %v2144_v53, %v2164_v23  ;;  %v1747_v23 = vmov 0.0  }
 0x1c9   : > { %1667 = vmatmul.msk.f32.gmra.mxu2 %vm914_vm3, %v1137_v3  ;;  %1304 = vst.msk [vmem:[#allocation2] sm:$0xff] %vm1303_vm4, %v1747_v23 }
 0x1ca   : > { %v1134_v9 = vmax.f32 %v1101_v5, 0.0  ;;  %v1110_v63 = vmax.f32 %v1083_v49, 0.0  ;;  %1305 = vst.msk [vmem:[#allocation2 + $0x8] sm:$0xff] %vm1303_vm4, %v1747_v23 }
 0x1cc   : > { %1270 = vmatpush.msrb.mxu3 %v1134_v9 }
 0x1ce   : > { %1271 = vmatpush.msrb.mxu3 %v1130_v50 }
 0x1d0   : > { %1272 = vmatpush.msrb.mxu3 %v1126_v14  ;;  %v1306_v9 = vld [vmem:[#allocation2] sm:$0xff] }
 0x1d1   : > { %1668 = vmatmul.msk.f32.gmra.mxu2 %vm914_vm3, %v1138_v46  ;;  %v1307_v10 = vld [vmem:[#allocation2 + $0x8] sm:$0xff] }
 0x1d2   : > { %1273 = vmatpush.msrb.mxu3 %v1122_v17 }
 0x1d4   : > { %1274 = vmatpush.msrb.mxu3 %v1118_v52 }
 0x1d6   : > { %1275 = vmatpush.msrb.mxu3 %v1114_v51  ;;  %v1330_v51 = vld [vmem:[%s2341_s8] sm:$0xff] }
 0x1d8   : > { %1276 = vmatpush.msrb.mxu3 %v1110_v63  ;;  %v1331_v63 = vld [vmem:[%s2341_s8 + $0x8] sm:$0xff] }
 0x1da   : > { %1277 = vmatpush.msrb.mxu3 %v1106_v18  ;;  %v1332_v18 = vld [vmem:[%s2341_s8 + $0x10] sm:$0xff] }
 0x1db   : > { %1669 = vmatmul.msk.f32.vlgmr.msrb.gmra.mxu3 %vm914_vm3, %v2180_v30 }
 0x1e3   : > { %1670 = vmatmul.msk.f32.gmra.mxu3 %vm914_vm3, %v1136_v42 }
 0x1eb   : > { %1671 = vmatmul.msk.f32.gmra.mxu3 %vm914_vm3, %v1137_v3 }
 0x1f3   : > { %1672 = vmatmul.msk.f32.gmra.mxu3 %vm914_vm3, %v1138_v46 }
 0x229   : > { %v1192_v53 = vpop.f32.mrf.mxu0 }
 0x22a   : > { %v1221_v19 = vpop.f32.mrf.mxu1  ;;  %v1193_v28 = vadd.f32 %v1192_v53, %v1146_v27  ;;  %v1333_v53 = vld [vmem:[%s2341_s8 + $0x18] sm:$0xff] }
 0x22b   : > { %v1222_v2 = vadd.f32 %v1221_v19, %v1146_v27 }
 0x231   : > { %v1195_v54 = vpop.f32.mrf.mxu0 }
 0x232   : > { %v1224_v21 = vpop.f32.mrf.mxu1  ;;  %v1196_v58 = vadd.f32 %v1195_v54, %v1151_v47 }
 0x233   : > { %v1225_v48 = vadd.f32 %v1224_v21, %v1151_v47  ;;  %v1336_v21 = vld [vmem:[%s2342_s9 + $0x10] sm:$0xff] }
 0x239   : > { %v1198_v24 = vpop.f32.mrf.mxu0 }
 0x23a   : > { %v1227_v6 = vpop.f32.mrf.mxu1  ;;  %v1199_v11 = vadd.f32 %v1198_v24, %v1156_v25 }
 0x23b   : > { %v1228_v15 = vadd.f32 %v1227_v6, %v1156_v25  ;;  %v1334_v6 = vld [vmem:[%s2342_s9] sm:$0xff] }
 0x23c   : > { %v1250_v20 = vpop.f32.mrf.mxu2  ;;  %v1291_v31 = vmul.f32 %v1199_v11, %v1193_v28  ;;  %v1384_v28 = vld [vmem:[%s2343_s10] sm:$0xff] }
 0x23d   : > { %v1292_v32 = vmul.f32 %v1228_v15, %v1222_v2  ;;  %v1251_v34 = vadd.f32 %v1250_v20, %v1146_v27  ;;  %v1385_v2 = vld [vmem:[%s2343_s10 + $0x8] sm:$0xff] }
 0x23f   : > { %v1308_v40 = vadd.f32 %v1292_v32, %v1291_v31  ;;  %v1387_v31 = vld [vmem:[%s2343_s10 + $0x18] sm:$0xff] }
 0x241   : > { %v1201_v35 = vpop.f32.mrf.mxu0 }
 0x242   : > { %v1230_v37 = vpop.f32.mrf.mxu1  ;;  %v1202_v43 = vadd.f32 %v1201_v35, %v1161_v29 }
 0x243   : > { %v1231_v44 = vadd.f32 %v1230_v37, %v1161_v29  ;;  %v1390_v37 = vld [vmem:[%s2344_s11 + $0x10] sm:$0xff] }
 0x244   : > { %v1253_v22 = vpop.f32.mrf.mxu2  ;;  %v1295_v0 = vmul.f32 %v1202_v43, %v1196_v58  ;;  %v1388_v43 = vld [vmem:[%s2344_s11] sm:$0xff] }
 0x245   : > { %v1296_v1 = vmul.f32 %v1231_v44, %v1225_v48  ;;  %v1254_v45 = vadd.f32 %v1253_v22, %v1151_v47  ;;  %v1337_v22 = vld [vmem:[%s2342_s9 + $0x18] sm:$0xff] }
 0x247   : > { %v1313_v33 = vadd.f32 %v1296_v1, %v1295_v0  ;;  %v1440_v0 = vld [vmem:[%s2345_s12 + $0x10] sm:$0xff]  ;;  %v1441_v1 = vld [vmem:[%s2345_s12 + $0x18] sm:$0xff] }
 0x24c   : > { %v1256_v12 = vpop.f32.mrf.mxu2 }
 0x24d   : > { %v1257_v7 = vadd.f32 %v1256_v12, %v1156_v25 }
 0x24f   : > { %v1293_v38 = vmul.f32 %v1257_v7, %v1251_v34  ;;  %v1386_v7 = vld [vmem:[%s2343_s10 + $0x10] sm:$0xff] }
 0x251   : > { %v1309_v42 = vadd.f32 %v1308_v40, %v1293_v38  ;;  %v1389_v38 = vld [vmem:[%s2344_s11 + $0x8] sm:$0xff] }
 0x254   : > { %v1259_v30 = vpop.f32.mrf.mxu2 }
 0x255   : > { %v1260_v60 = vadd.f32 %v1259_v30, %v1161_v29 }
 0x257   : > { %v1297_v36 = vmul.f32 %v1260_v60, %v1254_v45  ;;  %v1442_v45 = vld [vmem:[%s2346_s13] sm:$0xff] }
 0x259   : > { %v1314_v5 = vadd.f32 %v1313_v33, %v1297_v36 }
 0x25e   : > { %v1279_v13 = vpop.f32.mrf.mxu3 }
 0x25f   : > { %v1280_v55 = vadd.f32 %v1279_v13, %v1146_v27 }
 0x266   : > { %v1282_v26 = vpop.f32.mrf.mxu3 }
 0x267   : > { %v1283_v46 = vadd.f32 %v1282_v26, %v1151_v47  ;;  %v1335_v47 = vld [vmem:[%s2342_s9 + $0x8] sm:$0xff] }
 0x26e   : > { %v1285_v41 = vpop.f32.mrf.mxu3 }
 0x26f   : > { %v1286_v57 = vadd.f32 %v1285_v41, %v1156_v25 }
 0x271   : > { %v1294_v62 = vmul.f32 %v1286_v57, %v1280_v55 }
 0x273   : > { %v1310_v39 = vadd.f32 %v1309_v42, %v1294_v62  ;;  %v1438_v62 = vld [vmem:[%s2345_s12] sm:$0xff]  ;;  %v1439_v42 = vld [vmem:[%s2345_s12 + $0x8] sm:$0xff] }
 0x275   : > { %1311 = vadd.xlane.f32.xlu0 %v1310_v39 }
 0x276   : > { %v1288_v3 = vpop.f32.mrf.mxu3 }
 0x277   : > { %v1289_v4 = vadd.f32 %v1288_v3, %v1161_v29  ;;  %v1391_v29 = vld [vmem:[%s2344_s11 + $0x18] sm:$0xff]  ;;  %v1443_v3 = vld [vmem:[%s2346_s13 + $0x8] sm:$0xff] }
 0x279   : > { %v1298_v61 = vmul.f32 %v1289_v4, %v1283_v46  ;;  %v1444_v4 = vld [vmem:[%s2346_s13 + $0x10] sm:$0xff] }
 0x27b   : > { %v1315_v8 = vadd.f32 %v1314_v5, %v1298_v61 }
 0x27d   : > { %1316 = vadd.xlane.f32.xlu2 %v1315_v8  ;;  %v1445_v8 = vld [vmem:[%s2346_s13 + $0x18] sm:$0xff] }
 0x2e8   : > { %v1312_v56 = vpop.xlane.xlu0 %1311 }
 0x2e9   : > { %v1318_v50 = vadd.f32 %v1312_v56, %v1306_v9 }
 0x2eb   : > { %1321 = vst.msk [vmem:[#allocation2] sm:$0xff] %vm1303_vm4, %v1318_v50 }
 0x2f0   : > { %v1317_v14 = vpop.xlane.xlu2 %1316 }
 0x2f1   : > { %v1319_v16 = vadd.f32 %v1317_v14, %v1307_v10 }
 0x2f2   : > { %v1326_v49 = vld [vmem:[#allocation2] sm:$0xff] }
 0x2f3   : > { %1322 = vst.msk [vmem:[#allocation2 + $0x8] sm:$0xff] %vm1303_vm4, %v1319_v16  ;;  %v1328_v59 = vmul.f32 0.001953125, %v1326_v49 }
 0x2fa   : > { %v1327_v17 = vld [vmem:[#allocation2 + $0x8] sm:$0xff] }
 0x2fb   : > { %v1329_v52 = vmul.f32 0.001953125, %v1327_v17 }
 0x2fd   : > { %1365 = vmatpush.msrb.mxu0 %v1329_v52 }
 0x2ff   : > { %1366 = vmatpush.msrb.mxu0 %v1328_v59 }
 0x300   : > { %1673 = vmatmul.msk.f32.vlgmr.msrb.gmra.mxu0 %vm1338_vm5, %v1330_v51 }
 0x308   : > { %1674 = vmatmul.msk.f32.gmra.mxu0 %vm1338_vm5, %v1331_v63 }
 0x310   : > { %1675 = vmatmul.msk.f32.gmra.mxu0 %vm1338_vm5, %v1332_v18 }
 0x318   : > { %1676 = vmatmul.msk.f32.gmra.mxu0 %vm1338_vm5, %v1333_v53 }
 0x37d   : > { %v1368_v19 = vpop.f32.mrf.mxu0 }
 0x37e   : > { %v1369_v11 = vadd.f32 %v1368_v19, %v1334_v6 }
 0x380   : > { %v1380_v27 = vmax.f32 %v1369_v11, 0.0 }
 0x385   : > { %v1371_v20 = vpop.f32.mrf.mxu0 }
 0x386   : > { %v1372_v12 = vadd.f32 %v1371_v20, %v1335_v47 }
 0x388   : > { %v1381_v26 = vmax.f32 %v1372_v12, 0.0 }
 0x38d   : > { %v1374_v54 = vpop.f32.mrf.mxu0 }
 0x38e   : > { %v1375_v23 = vadd.f32 %v1374_v54, %v1336_v21 }
 0x390   : > { %v1382_v15 = vmax.f32 %v1375_v23, 0.0 }
 0x395   : > { %v1377_v13 = vpop.f32.mrf.mxu0 }
 0x396   : > { %v1378_v24 = vadd.f32 %v1377_v13, %v1337_v22 }
 0x398   : > { %v1383_v25 = vmax.f32 %v1378_v24, 0.0 }
 0x39a   : > { %1417 = vmatpush.msrb.mxu1 %v1383_v25 }
 0x39c   : > { %1418 = vmatpush.msrb.mxu1 %v1382_v15 }
 0x39e   : > { %1419 = vmatpush.msrb.mxu1 %v1381_v26 }
 0x3a0   : > { %1420 = vmatpush.msrb.mxu1 %v1380_v27 }
 0x3a1   : > { %1677 = vmatmul.msk.f32.vlgmr.msrb.gmra.mxu1 %vm1392_vm6, %v1384_v28 }
 0x3a9   : > { %1678 = vmatmul.msk.f32.gmra.mxu1 %vm1392_vm6, %v1385_v2 }
 0x3b1   : > { %1679 = vmatmul.msk.f32.gmra.mxu1 %vm1392_vm6, %v1386_v7 }
 0x3b9   : > { %1680 = vmatmul.msk.f32.gmra.mxu1 %vm1392_vm6, %v1387_v31 }
 0x41e   : > { %v1422_v32 = vpop.f32.mrf.mxu1 }
 0x41f   : > { %v1423_v57 = vadd.f32 %v1422_v32, %v1388_v43 }
 0x421   : > { %v1434_v60 = vmax.f32 %v1423_v57, 0.0 }
 0x426   : > { %v1425_v34 = vpop.f32.mrf.mxu1 }
 0x427   : > { %v1426_v44 = vadd.f32 %v1425_v34, %v1389_v38 }
 0x429   : > { %v1435_v48 = vmax.f32 %v1426_v44, 0.0 }
 0x42e   : > { %v1428_v35 = vpop.f32.mrf.mxu1 }
 0x42f   : > { %v1429_v30 = vadd.f32 %v1428_v35, %v1390_v37 }
 0x431   : > { %v1436_v58 = vmax.f32 %v1429_v30, 0.0 }
 0x436   : > { %v1431_v40 = vpop.f32.mrf.mxu1 }
 0x437   : > { %v1432_v41 = vadd.f32 %v1431_v40, %v1391_v29 }
 0x439   : > { %v1437_v55 = vmax.f32 %v1432_v41, 0.0 }
 0x43b   : > { %1470 = vmatpush.msrb.mxu2 %v1437_v55 }
 0x43d   : > { %1471 = vmatpush.msrb.mxu2 %v1436_v58 }
 0x43f   : > { %1472 = vmatpush.msrb.mxu2 %v1435_v48 }
 0x441   : > { %1473 = vmatpush.msrb.mxu2 %v1434_v60 }
 0x442   : > { %1681 = vmatmul.msk.f32.vlgmr.msrb.gmra.mxu2 %vm1392_vm6, %v1438_v62 }
 0x44a   : > { %1682 = vmatmul.msk.f32.gmra.mxu2 %vm1392_vm6, %v1439_v42 }
 0x452   : > { %1683 = vmatmul.msk.f32.gmra.mxu2 %vm1392_vm6, %v1440_v0 }
 0x45a   : > { %1684 = vmatmul.msk.f32.gmra.mxu2 %vm1392_vm6, %v1441_v1 }
 0x4c5   : > { %v1475_v39 = vpop.f32.mrf.mxu2 }
 0x4c6   : > { %v1476_v36 = vadd.f32 %v1475_v39, %v1442_v45 }
 0x4c8   : > { %1487 = vst.msk [vmem:[%s531_s17] sm:$0xff] %vm1303_vm4, %v1476_v36 }
 0x4cd   : > { %v1478_v33 = vpop.f32.mrf.mxu2 }
 0x4ce   : > { %v1479_v46 = vadd.f32 %v1478_v33, %v1443_v3 }
 0x4d0   : > { %1488 = vst.msk [vmem:[%s531_s17 + $0x8] sm:$0xff] %vm1303_vm4, %v1479_v46 }
 0x4d5   : > { %v1481_v61 = vpop.f32.mrf.mxu2 }
 0x4d6   : > { %v1482_v5 = vadd.f32 %v1481_v61, %v1444_v4 }
 0x4d8   : > { %1489 = vst.msk [vmem:[%s531_s17 + $0x10] sm:$0xff] %vm1303_vm4, %v1482_v5 }
 0x4dd   : > { %v1484_v9 = vpop.f32.mrf.mxu2 }
 0x4de   : > { %v1485_v56 = vadd.f32 %v1484_v9, %v1445_v8 }
 0x4e0   : > { %1490 = vst.msk [vmem:[%s531_s17 + $0x18] sm:$0xff] %vm1303_vm4, %v1485_v56 }
 0x4e1 PF: > { %s24_s15 = sadd.s32 1, %s1744_s15   ;;  %s2348_s29 = smov %s1740_s30 }
 0x4e2   : > { %p21_p5 = scmp.ge.s32.totalorder %s24_s15, 4   ;;  %s2349_s30 = smov %s2351_s16 }
 0x4e4   :  { %23 = sbr.rel (!%p21_p5) target bundleno = 2 (0x2), region = 120 }

</bundles_post_ra>
